<compile_context>
chip_gen: v6e
topology: v6e:2x2x1
jax: 0.10.0
libtpu: 0.0.40
codegen_flags: <defaults>
</compile_context>

<pallas_src>
import jax
import jax.numpy as jnp
from jax.experimental import pallas as pl
from jax.experimental.pallas import tpu as pltpu

FOCAL_ALPHA = 0.5
FOCAL_BETA = 0.4
FOCAL_GAMMA = 4.0 / 3.0
LOSS_WEIGHT = 1.0
EPS = 1e-7
LANE = 128


def _make_stats_kernel(C, TK, SUB, TILES, P_valid, needs_mask):
    """Per-tile statistics kernel.

    pred_ref: (N, C, TK, 128) logits tile (producer dtype)
    tgt_ref : (N, TK, 128)    i32 label tile
    out_ref : (1, 3, C, 128)  f32 per-chunk accumulator
              row 0 = sum(p*y), row 1 = sum(p), row 2 = sum(y)
              (lane axis = pixel lane; reduced to scalars in the wrapper)
    """
    n_sub = TK // SUB

    def kernel(pred_ref, tgt_ref, out_ref):
        c = pl.program_id(0)          # chunk (parallel)
        t = pl.program_id(1)          # tile within chunk (reduction axis)

        @pl.when(t == 0)
        def _():
            out_ref[...] = jnp.zeros_like(out_ref)

        row0_tile = (c * TILES + t) * TK

        def sub_block(s):
            r0 = s * SUB
            if n_sub > 1:
                r0 = pl.multiple_of(r0, SUB)

            # Cast to f32 in-kernel (free VPU work under a memory-bound regime).
            logits = pred_ref[:, :, pl.ds(r0, SUB), :].astype(jnp.float32)

            # softmax over channel axis (dim=1 in NCHW); exact reciprocal for
            # the denominator (amortized over C, removes systematic bias).
            m = jnp.max(logits, axis=1, keepdims=True)
            e = jnp.exp(logits - m)
            sm = e / jnp.sum(e, axis=1, keepdims=True)

            # smp binary losses (from_logits=True) re-apply sigmoid on the prob.
            # sigmoid(x) = 0.5 + 0.5*tanh(x/2): a single EUP op per element.
            p = 0.5 + 0.5 * jnp.tanh(0.5 * sm)               # (N, C, SUB, 128)

            tgt = jnp.clip(tgt_ref[:, pl.ds(r0, SUB), :], 0, C - 1)
            cls = jax.lax.broadcasted_iota(jnp.int32, p.shape, 1)
            match = tgt[:, None, :, :] == cls                 # boolean one-hot

            if needs_mask:
                # Mask lane padding and undefined data of ragged edge blocks.
                row_base = row0_tile + s * SUB
                k_iota = jax.lax.broadcasted_iota(jnp.int32, (SUB, LANE), 0)
                l_iota = jax.lax.broadcasted_iota(jnp.int32, (SUB, LANE), 1)
                pix = (row_base + k_iota) * LANE + l_iota
                valid = (pix < P_valid)[None, None, :, :]
                match = jnp.logical_and(match, valid)
                # Keep the select (not a multiply): filters NaN/Inf from the
                # undefined region of partially out-of-bounds edge blocks.
                p = jnp.where(valid, p, 0.0)

            inter_p = jnp.where(match, p, 0.0)                # p * y
            y = match.astype(jnp.float32)

            def red(x):   # (N, C, SUB, 128) -> (C, 128): keep lanes resident
                return jnp.sum(jnp.sum(x, axis=0), axis=1)

            out_ref[0, 0, :, :] += red(inter_p)
            out_ref[0, 1, :, :] += red(p)
            out_ref[0, 2, :, :] += red(y)

        if n_sub == 1:
            sub_block(0)
        else:
            # Real loop (not unrolled) to bound the VMEM working set while the
            # DMA tile grows for bandwidth efficiency.
            pl.loop(0, n_sub)(sub_block)

    return kernel


def hybrid_loss(pred, target,
                focal_alpha=FOCAL_ALPHA, focal_beta=FOCAL_BETA,
                focal_gamma=FOCAL_GAMMA, loss_weight=LOSS_WEIGHT):
    N, C, H, W = pred.shape
    P = H * W
    R = -(-P // LANE)                     # rows of 128 pixels
    P_lane = R * LANE

    # Keep pred in its producer dtype (bf16 stays bf16 -> half the HBM reads);
    # the f32 cast happens inside the kernel.
    if pred.dtype not in (jnp.float32, jnp.bfloat16, jnp.float16):
        pred = pred.astype(jnp.float32)
    pred_bytes = jnp.dtype(pred.dtype).itemsize

    pred_r = pred.reshape(N, C, P)
    tgt_r = target.reshape(N, P).astype(jnp.int32)
    if P_lane != P:
        # Pad only up to a lane multiple (<=127 pixels; usually a no-op). The
        # TK / chunk raggedness is handled by edge blocks + the in-kernel mask,
        # so the old full re-pad of pred through HBM is gone.
        pad = P_lane - P
        pred_r = jnp.pad(pred_r, ((0, 0), (0, 0), (0, pad)))
        tgt_r = jnp.pad(tgt_r, ((0, 0), (0, pad)))
    pred_r = pred_r.reshape(N, C, R, LANE)
    tgt_r = tgt_r.reshape(N, R, LANE)

    # ---------------- per-generation sizing --------------------------------
    try:
        vmem_cap = int(pltpu.get_tpu_info().vmem_capacity_bytes)
    except Exception:
        vmem_cap = 64 << 20               # conservative (v7x-sized) fallback

    row_bytes_ws = N * C * LANE * 4                            # f32 work / row
    row_bytes_in = N * C * LANE * pred_bytes + N * LANE * 4    # DMA bytes / row

    min_rows = {4: 8, 2: 16, 1: 32}.get(pred_bytes, 8)
    R8 = max(min_rows, -(-R // min_rows) * min_rows)

    # Inner compute sub-block: ~1 MiB f32 working set, independent of DMA tile.
    SUB = max(min_rows, min(256, ((1 << 20) // max(row_bytes_ws, 1))
                            // min_rows * min_rows))
    SUB = min(SUB, R8)

    # DMA tile: ~4 MiB/step on 64 MiB-VMEM chips (v7x), ~8 MiB on 128 MiB chips.
    tile_budget = (8 << 20) if vmem_cap >= (96 << 20) else (4 << 20)
    n_sub = max(1, min(16, tile_budget // max(SUB * row_bytes_in, 1)))
    TK = min(SUB * n_sub, -(-R8 // SUB) * SUB)
    n_sub = TK // SUB

    # TODO(synk): on v7x verify the chunk axis shards across both TensorCores;
    # if a profile shows both chunks on one TC, switch to pltpu.CORE_PARALLEL.
    NCHUNKS = 2 if R >= 2 * TK else 1
    TILES = -(-R // (NCHUNKS * TK))
    LAST_BLK = -(-R // TK) - 1            # last (at least partially) valid block
    needs_mask = (NCHUNKS * TILES * TK * LANE != P)

    kernel = _make_stats_kernel(C, TK, SUB, TILES, P, needs_mask)

    in_tile_bytes = N * C * TK * LANE * pred_bytes + N * TK * LANE * 4
    sub_ws_bytes = N * C * SUB * LANE * 4
    vmem_limit = int(min(max(2 * in_tile_bytes + 8 * sub_ws_bytes + (4 << 20),
                             16 << 20),
                         (vmem_cap * 3) // 4))

    n_elem = N * C * NCHUNKS * TILES * TK * LANE
    cost = pl.CostEstimate(
        flops=int(16 * n_elem),
        transcendentals=int(2 * n_elem),
        bytes_accessed=int(pred_bytes * N * C * P_lane + 4 * N * P_lane
                           + 4 * NCHUNKS * 3 * C * LANE),
    )

    stats = pl.pallas_call(
        kernel,
        out_shape=jax.ShapeDtypeStruct((NCHUNKS, 3, C, LANE), jnp.float32),
        grid_spec=pltpu.PrefetchScalarGridSpec(
            num_scalar_prefetch=0,
            grid=(NCHUNKS, TILES),
            in_specs=[
                pl.BlockSpec(
                    (N, C, TK, LANE),
                    lambda c, t: (0, 0, jnp.minimum(c * TILES + t, LAST_BLK), 0)),
                pl.BlockSpec(
                    (N, TK, LANE),
                    lambda c, t: (0, jnp.minimum(c * TILES + t, LAST_BLK), 0)),
            ],
            out_specs=pl.BlockSpec((1, 3, C, LANE), lambda c, t: (c, 0, 0, 0)),
        ),
        compiler_params=pltpu.CompilerParams(
            dimension_semantics=("parallel", "arbitrary"),
            vmem_limit_bytes=vmem_limit),
        cost_estimate=cost,
    )(pred_r, tgt_r)

    # ---------------- O(C) epilogue in plain JAX ----------------------------
    stats = jnp.sum(stats, axis=(0, 3))          # chunks + lanes -> (3, C)
    inter, sum_p, sum_y = stats[0], stats[1], stats[2]
    fp = sum_p - inter                           # sum(p*(1-y))
    fn = sum_y - inter                           # sum((1-p)*y)
    card = sum_p + sum_y                         # sum(p + y)

    mask = (sum_y > 0).astype(jnp.float32)
    tv_score = inter / jnp.maximum(inter + focal_alpha * fp + focal_beta * fn, EPS)
    tv_base = jnp.maximum((1.0 - tv_score) * mask, 0.0)   # guard pow() NaN
    tv_loss = jnp.power(tv_base, focal_gamma)
    jac_score = inter / jnp.maximum(card - inter, EPS)
    jac_loss = (1.0 - jac_score) * mask
    return jnp.sum(loss_weight * (tv_loss + jac_loss)) / C


def hybrid_loss_ref(pred, target,
                    focal_alpha=FOCAL_ALPHA, focal_beta=FOCAL_BETA,
                    focal_gamma=FOCAL_GAMMA, loss_weight=LOSS_WEIGHT):
    """Pure-JAX reference mirroring the PyTorch module (for validation)."""
    sm = jax.nn.softmax(pred.astype(jnp.float32), axis=1)
    C = pred.shape[1]
    oh = jax.nn.one_hot(jnp.clip(target, 0, C - 1), C, dtype=jnp.float32)
    loss = 0.0
    for i in range(C):
        p = jax.nn.sigmoid(sm[:, i])
        y = oh[..., i]
        inter = jnp.sum(p * y)
        fp = jnp.sum(p * (1.0 - y))
        fn = jnp.sum((1.0 - p) * y)
        card = jnp.sum(p + y)
        mask = (jnp.sum(y) > 0).astype(jnp.float32)
        tv = ((1.0 - inter / jnp.maximum(inter + focal_alpha * fp + focal_beta * fn, EPS))
              * mask) ** focal_gamma
        jac = (1.0 - inter / jnp.maximum(card - inter, EPS)) * mask
        loss = loss + loss_weight * (tv + jac)
    return loss / C


if __name__ == "__main__":
    key = jax.random.PRNGKey(0)
    kp, kt = jax.random.split(key)
    N, C, H, W = 2, 4, 16, 16
    pred = jax.random.normal(kp, (N, C, H, W), dtype=jnp.float32)
    target = jax.random.randint(kt, (N, H, W), 0, C, dtype=jnp.int32)

    out = jax.jit(hybrid_loss)(pred, target)
    out = jax.block_until_ready(out)

    ref = hybrid_loss_ref(pred, target)
    assert jnp.allclose(out, ref, rtol=1e-3, atol=1e-5), (float(out), float(ref))
    print("KERNEL_OK")
</pallas_src>

<mosaic_0001>
module attributes {stable_mosaic.version = 11 : i64} {
  func.func @kernel(%arg0: i32, %arg1: i32, %arg2: memref<2x4x8x128xf32, #tpu.memory_space<vmem>>, %arg3: memref<2x8x128xi32, #tpu.memory_space<vmem>>, %arg4: memref<1x3x4x128xf32, #tpu.memory_space<vmem>>) attributes {dimension_semantics = [#tpu.dimension_semantics<parallel>, #tpu.dimension_semantics<arbitrary>], iteration_bounds = array<i64: 1, 1>, scalar_prefetch = 0 : i64, scratch_operands = 0 : i64, tpu.core_type = #tpu.core_type<tc>, window_params = [{transform_indices = @transform_0, window_bounds = array<i64: 2, 4, 8, 128>}, {transform_indices = @transform_1, window_bounds = array<i64: 2, 8, 128>}, {transform_indices = @transform_2, window_bounds = array<i64: 1, 3, 4, 128>}]} {
    %c0_i32 = arith.constant 0 : i32
    %0 = arith.cmpi eq, %arg1, %c0_i32 : i32
    %1 = arith.extui %0 : i1 to i32
    %c0_i32_0 = arith.constant 0 : i32
    %2 = arith.cmpi ne, %1, %c0_i32_0 : i32
    scf.if %2 {
      %cst_43 = arith.constant 0.000000e+00 : f32
      %77 = vector.broadcast %cst_43 : f32 to vector<1x3x4x128xf32>
      %c0_44 = arith.constant 0 : index
      %c0_45 = arith.constant 0 : index
      %c0_46 = arith.constant 0 : index
      %c0_47 = arith.constant 0 : index
      %78 = vector.load %arg4[%c0_44, %c0_45, %c0_46, %c0_47] : memref<1x3x4x128xf32, #tpu.memory_space<vmem>>, vector<1x3x4x128xf32>
      tpu.vector_store %arg4[%c0_44, %c0_45, %c0_46, %c0_47], %77 {strides = array<i32>} : memref<1x3x4x128xf32, #tpu.memory_space<vmem>>, vector<1x3x4x128xf32>,
    } else {
    }
    %c1_i32 = arith.constant 1 : i32
    %3 = arith.muli %arg0, %c1_i32 : i32
    %4 = arith.addi %3, %arg1 : i32
    %c8_i32 = arith.constant 8 : i32
    %5 = arith.muli %4, %c8_i32 : i32
    %c0 = arith.constant 0 : index
    %c0_1 = arith.constant 0 : index
    %c0_2 = arith.constant 0 : index
    %c0_3 = arith.constant 0 : index
    %6 = vector.load %arg2[%c0, %c0_1, %c0_2, %c0_3] : memref<2x4x8x128xf32, #tpu.memory_space<vmem>>, vector<2x4x8x128xf32>
    %cst = arith.constant dense<0xFF800000> : vector<2x8x128xf32>
    %7 = vector.multi_reduction <maximumf>, %6, %cst [1] : vector<2x4x8x128xf32> to vector<2x8x128xf32>
    %8 = vector.shape_cast %7 : vector<2x8x128xf32> to vector<2x1x8x128xf32>
    %9 = vector.broadcast %8 : vector<2x1x8x128xf32> to vector<2x4x8x128xf32>
    %10 = arith.subf %6, %9 : vector<2x4x8x128xf32>
    %11 = math.exp %10 : vector<2x4x8x128xf32>
    %cst_4 = arith.constant dense<0.000000e+00> : vector<2x8x128xf32>
    %12 = vector.multi_reduction <add>, %11, %cst_4 [1] : vector<2x4x8x128xf32> to vector<2x8x128xf32>
    %13 = vector.shape_cast %12 : vector<2x8x128xf32> to vector<2x1x8x128xf32>
    %14 = vector.broadcast %13 : vector<2x1x8x128xf32> to vector<2x4x8x128xf32>
    %15 = arith.divf %11, %14 : vector<2x4x8x128xf32>
    %cst_5 = arith.constant 5.000000e-01 : f32
    %16 = vector.broadcast %cst_5 : f32 to vector<2x4x8x128xf32>
    %17 = arith.mulf %16, %15 : vector<2x4x8x128xf32>
    %18 = math.tanh %17 : vector<2x4x8x128xf32>
    %cst_6 = arith.constant 5.000000e-01 : f32
    %19 = vector.broadcast %cst_6 : f32 to vector<2x4x8x128xf32>
    %20 = arith.mulf %19, %18 : vector<2x4x8x128xf32>
    %cst_7 = arith.constant 5.000000e-01 : f32
    %21 = vector.broadcast %cst_7 : f32 to vector<2x4x8x128xf32>
    %22 = arith.addf %21, %20 : vector<2x4x8x128xf32>
    %c0_8 = arith.constant 0 : index
    %c0_9 = arith.constant 0 : index
    %c0_10 = arith.constant 0 : index
    %23 = vector.load %arg3[%c0_8, %c0_9, %c0_10] : memref<2x8x128xi32, #tpu.memory_space<vmem>>, vector<2x8x128xi32>
    %c0_i32_11 = arith.constant 0 : i32
    %c3_i32 = arith.constant 3 : i32
    %24 = vector.broadcast %c0_i32_11 : i32 to vector<2x8x128xi32>
    %25 = arith.maxsi %24, %23 : vector<2x8x128xi32>
    %26 = vector.broadcast %c3_i32 : i32 to vector<2x8x128xi32>
    %27 = arith.minsi %26, %25 : vector<2x8x128xi32>
    %28 = tpu.iota {dimensions = array<i32: 1>} : vector<2x4x8x128xi32>
    %29 = vector.shape_cast %27 : vector<2x8x128xi32> to vector<2x1x8x128xi32>
    %30 = vector.broadcast %29 : vector<2x1x8x128xi32> to vector<2x4x8x128xi32>
    %31 = arith.cmpi eq, %30, %28 : vector<2x4x8x128xi32>
    %c0_i32_12 = arith.constant 0 : i32
    %32 = arith.addi %5, %c0_i32_12 : i32
    %33 = tpu.iota {dimensions = array<i32: 0>} : vector<8x128xi32>
    %34 = tpu.iota {dimensions = array<i32: 1>} : vector<8x128xi32>
    %35 = vector.broadcast %32 : i32 to vector<8x128xi32>
    %36 = arith.addi %35, %33 : vector<8x128xi32>
    %c128_i32 = arith.constant 128 : i32
    %37 = vector.broadcast %c128_i32 : i32 to vector<8x128xi32>
    %38 = arith.muli %36, %37 : vector<8x128xi32>
    %39 = arith.addi %38, %34 : vector<8x128xi32>
    %c256_i32 = arith.constant 256 : i32
    %40 = vector.broadcast %c256_i32 : i32 to vector<8x128xi32>
    %41 = arith.cmpi slt, %39, %40 : vector<8x128xi32>
    %42 = vector.shape_cast %41 : vector<8x128xi1> to vector<1x1x8x128xi1>
    %43 = vector.broadcast %42 : vector<1x1x8x128xi1> to vector<2x4x8x128xi1>
    %44 = arith.andi %31, %43 : vector<2x4x8x128xi1>
    %cst_13 = arith.constant 0.000000e+00 : f32
    %45 = vector.shape_cast %42 : vector<1x1x8x128xi1> to vector<1x1x8x128xi1>
    %46 = vector.broadcast %45 : vector<1x1x8x128xi1> to vector<2x4x8x128xi1>
    %47 = vector.broadcast %cst_13 : f32 to vector<2x4x8x128xf32>
    %48 = arith.select %46, %22, %47 : vector<2x4x8x128xi1>, vector<2x4x8x128xf32>
    %cst_14 = arith.constant 0.000000e+00 : f32
    %49 = vector.broadcast %cst_14 : f32 to vector<2x4x8x128xf32>
    %50 = arith.select %44, %48, %49 : vector<2x4x8x128xi1>, vector<2x4x8x128xf32>
    %51 = arith.extui %44 : vector<2x4x8x128xi1> to vector<2x4x8x128xi32>
    %52 = arith.sitofp %51 : vector<2x4x8x128xi32> to vector<2x4x8x128xf32>
    %c0_15 = arith.constant 0 : index
    %c0_16 = arith.constant 0 : index
    %c0_17 = arith.constant 0 : index
    %c0_18 = arith.constant 0 : index
    %53 = vector.load %arg4[%c0_15, %c0_16, %c0_17, %c0_18] : memref<1x3x4x128xf32, #tpu.memory_space<vmem>>, vector<1x1x4x128xf32>
    %54 = vector.shape_cast %53 : vector<1x1x4x128xf32> to vector<4x128xf32>
    %cst_19 = arith.constant dense<0.000000e+00> : vector<4x8x128xf32>
    %55 = vector.multi_reduction <add>, %50, %cst_19 [0] : vector<2x4x8x128xf32> to vector<4x8x128xf32>
    %cst_20 = arith.constant dense<0.000000e+00> : vector<4x128xf32>
    %56 = vector.multi_reduction <add>, %55, %cst_20 [1] : vector<4x8x128xf32> to vector<4x128xf32>
    %57 = arith.addf %54, %56 : vector<4x128xf32>
    %c0_21 = arith.constant 0 : index
    %c0_22 = arith.constant 0 : index
    %c0_23 = arith.constant 0 : index
    %c0_24 = arith.constant 0 : index
    %58 = vector.load %arg4[%c0_21, %c0_22, %c0_23, %c0_24] : memref<1x3x4x128xf32, #tpu.memory_space<vmem>>, vector<1x1x4x128xf32>
    %59 = vector.shape_cast %58 : vector<1x1x4x128xf32> to vector<4x128xf32>
    %60 = vector.shape_cast %57 : vector<4x128xf32> to vector<1x1x4x128xf32>
    tpu.vector_store %arg4[%c0_21, %c0_22, %c0_23, %c0_24], %60 {strides = array<i32>} : memref<1x3x4x128xf32, #tpu.memory_space<vmem>>, vector<1x1x4x128xf32>,
    %c0_25 = arith.constant 0 : index
    %c1 = arith.constant 1 : index
    %c0_26 = arith.constant 0 : index
    %c0_27 = arith.constant 0 : index
    %61 = vector.load %arg4[%c0_25, %c1, %c0_26, %c0_27] : memref<1x3x4x128xf32, #tpu.memory_space<vmem>>, vector<1x1x4x128xf32>
    %62 = vector.shape_cast %61 : vector<1x1x4x128xf32> to vector<4x128xf32>
    %cst_28 = arith.constant dense<0.000000e+00> : vector<4x8x128xf32>
    %63 = vector.multi_reduction <add>, %48, %cst_28 [0] : vector<2x4x8x128xf32> to vector<4x8x128xf32>
    %cst_29 = arith.constant dense<0.000000e+00> : vector<4x128xf32>
    %64 = vector.multi_reduction <add>, %63, %cst_29 [1] : vector<4x8x128xf32> to vector<4x128xf32>
    %65 = arith.addf %62, %64 : vector<4x128xf32>
    %c0_30 = arith.constant 0 : index
    %c1_31 = arith.constant 1 : index
    %c0_32 = arith.constant 0 : index
    %c0_33 = arith.constant 0 : index
    %66 = vector.load %arg4[%c0_30, %c1_31, %c0_32, %c0_33] : memref<1x3x4x128xf32, #tpu.memory_space<vmem>>, vector<1x1x4x128xf32>
    %67 = vector.shape_cast %66 : vector<1x1x4x128xf32> to vector<4x128xf32>
    %68 = vector.shape_cast %65 : vector<4x128xf32> to vector<1x1x4x128xf32>
    tpu.vector_store %arg4[%c0_30, %c1_31, %c0_32, %c0_33], %68 {strides = array<i32>} : memref<1x3x4x128xf32, #tpu.memory_space<vmem>>, vector<1x1x4x128xf32>,
    %c0_34 = arith.constant 0 : index
    %c2 = arith.constant 2 : index
    %c0_35 = arith.constant 0 : index
    %c0_36 = arith.constant 0 : index
    %69 = vector.load %arg4[%c0_34, %c2, %c0_35, %c0_36] : memref<1x3x4x128xf32, #tpu.memory_space<vmem>>, vector<1x1x4x128xf32>
    %70 = vector.shape_cast %69 : vector<1x1x4x128xf32> to vector<4x128xf32>
    %cst_37 = arith.constant dense<0.000000e+00> : vector<4x8x128xf32>
    %71 = vector.multi_reduction <add>, %52, %cst_37 [0] : vector<2x4x8x128xf32> to vector<4x8x128xf32>
    %cst_38 = arith.constant dense<0.000000e+00> : vector<4x128xf32>
    %72 = vector.multi_reduction <add>, %71, %cst_38 [1] : vector<4x8x128xf32> to vector<4x128xf32>
    %73 = arith.addf %70, %72 : vector<4x128xf32>
    %c0_39 = arith.constant 0 : index
    %c2_40 = arith.constant 2 : index
    %c0_41 = arith.constant 0 : index
    %c0_42 = arith.constant 0 : index
    %74 = vector.load %arg4[%c0_39, %c2_40, %c0_41, %c0_42] : memref<1x3x4x128xf32, #tpu.memory_space<vmem>>, vector<1x1x4x128xf32>
    %75 = vector.shape_cast %74 : vector<1x1x4x128xf32> to vector<4x128xf32>
    %76 = vector.shape_cast %73 : vector<4x128xf32> to vector<1x1x4x128xf32>
    tpu.vector_store %arg4[%c0_39, %c2_40, %c0_41, %c0_42], %76 {strides = array<i32>} : memref<1x3x4x128xf32, #tpu.memory_space<vmem>>, vector<1x1x4x128xf32>,
    return
  }
  func.func @transform_0(%arg0: i32, %arg1: i32) -> (i32, i32, i32, i32) {
    %c1_i32 = arith.constant 1 : i32
    %0 = arith.muli %arg0, %c1_i32 : i32
    %1 = arith.addi %0, %arg1 : i32
    %c0_i32 = arith.constant 0 : i32
    %2 = arith.minsi %1, %c0_i32 : i32
    %c0_i32_0 = arith.constant 0 : i32
    %c0_i32_1 = arith.constant 0 : i32
    %c0_i32_2 = arith.constant 0 : i32
    %c0_i32_3 = arith.constant 0 : i32
    return %c0_i32_0, %c0_i32_1, %2, %c0_i32_2 : i32, i32, i32, i32
  }
  func.func @transform_1(%arg0: i32, %arg1: i32) -> (i32, i32, i32) {
    %c1_i32 = arith.constant 1 : i32
    %0 = arith.muli %arg0, %c1_i32 : i32
    %1 = arith.addi %0, %arg1 : i32
    %c0_i32 = arith.constant 0 : i32
    %2 = arith.minsi %1, %c0_i32 : i32
    %c0_i32_0 = arith.constant 0 : i32
    %c0_i32_1 = arith.constant 0 : i32
    %c0_i32_2 = arith.constant 0 : i32
    return %c0_i32_0, %2, %c0_i32_1 : i32, i32, i32
  }
  func.func @transform_2(%arg0: i32, %arg1: i32) -> (i32, i32, i32, i32) {
    %c0_i32 = arith.constant 0 : i32
    %c0_i32_0 = arith.constant 0 : i32
    %c0_i32_1 = arith.constant 0 : i32
    %c0_i32_2 = arith.constant 0 : i32
    return %arg0, %c0_i32, %c0_i32_0, %c0_i32_1 : i32, i32, i32, i32
  }
}

</mosaic_0001>

<bundles_post_ra>
// kernel: hybrid_loss.1
= control target key start
LH: loop header
LB: loop body
LE: loop exit
PB: predicated region body
PF: predicated region fallthrough
CT: control target
= control target key end

     0   :  { %s684_s9 = smov 0   ;;  %s884_s0 = inlined_call_operand.vmem [shape: f32[2,4,2,128], index: 0, kind: input, shape index: {}]   ;;  %s885_s1 = inlined_call_operand.vmem [shape: s32[2,2,128], index: 1, kind: input, shape index: {}]   ;;  %s886_s2 = inlined_call_operand.vmem [shape: f32[1,3,4,128], index: 2, kind: output, shape index: {}]  }
   0x1 LB: > { %v36_v0 = vld [vmem:[%s884_s0] sm:$0x3]  ;;  %v38_v1 = vld [vmem:[%s884_s0 + $0x2] sm:$0x3]  ;;  %v40_v2 = vld [vmem:[%s884_s0 + $0x4] sm:$0x3]  ;;  %s686_s9 = sphi %s684_s9, %s30_s9  }
   0x2   : > { %37 = vst [vmem:[#allocation2] sm:$0x3] %v36_v0  ;;  %39 = vst [vmem:[#allocation2 + $0x8] sm:$0x3] %v38_v1  ;;  %v42_v3 = vld [vmem:[%s884_s0 + $0x6] sm:$0x3] }
   0x3   : > { %41 = vst [vmem:[#allocation2 + $0x10] sm:$0x3] %v40_v2  ;;  %v44_v4 = vld [vmem:[%s884_s0 + $0x8] sm:$0x3]  ;;  %v46_v5 = vld [vmem:[%s884_s0 + $0xa] sm:$0x3] }
   0x4   : > { %43 = vst [vmem:[#allocation2 + $0x18] sm:$0x3] %v42_v3  ;;  %45 = vst [vmem:[#allocation2 + $0x20] sm:$0x3] %v44_v4  ;;  %v48_v6 = vld [vmem:[%s884_s0 + $0xc] sm:$0x3] }
   0x5   : > { %47 = vst [vmem:[#allocation2 + $0x28] sm:$0x3] %v46_v5  ;;  %v50_v7 = vld [vmem:[%s884_s0 + $0xe] sm:$0x3]  ;;  %49 = vst [vmem:[#allocation2 + $0x30] sm:$0x3] %v48_v6 }
   0x6   : > { %51 = vst [vmem:[#allocation2 + $0x38] sm:$0x3] %v50_v7  ;;  %s30_s9 = sadd.s32 1, %s686_s9  }
   0x7   : > { %p29_p0 = scmp.ge.s32.totalorder %s30_s9, 1 }
   0x8   :  { %s688_s26 = smov (%p29_p0), 0  }
   0x9   :  { %32 = sbr.rel (!%p29_p0) target bundleno = 1 (0x1), region = 121 }
   0xe LB: > { %v141_v8 = vld [vmem:[%s885_s1] sm:$0x3]  ;;  %v143_v9 = vld [vmem:[%s885_s1 + $0x2] sm:$0x3]  ;;  %s135_s26 = sadd.s32 1, %s690_s26   ;;  %s690_s26 = sphi %s688_s26, %s135_s26  }
   0xf   : > { %142 = vst [vmem:[#allocation3] sm:$0x3] %v141_v8  ;;  %144 = vst [vmem:[#allocation3 + $0x8] sm:$0x3] %v143_v9  ;;  %p134_p1 = scmp.ge.s32.totalorder %s135_s26, 1 }
  0x10   :  { %v202_v10 = vld [vmem:[#allocation2] sm:$0xff] (%p134_p1)  ;;  %v203_v11 = vld [vmem:[#allocation2 + $0x8] sm:$0xff] (%p134_p1)  ;;  %v204_v12 = vld [vmem:[#allocation2 + $0x10] sm:$0xff] (%p134_p1)  ;;  %v306_v13 = vlaneseq (%p134_p1)  ;;  %v692_v14 = vmov (%p134_p1), 0.0  }
  0x11   :  { %137 = sbr.rel (!%p134_p1) target bundleno = 14 (0xe), region = 132  ;;  %197 = vst [vmem:[%s886_s2] sm:$0xf] (%p134_p1), %v692_v14  ;;  %198 = vst [vmem:[%s886_s2 + $0x4] sm:$0xf] (%p134_p1), %v692_v14  ;;  %v205_v15 = vld [vmem:[#allocation2 + $0x18] sm:$0xff] (%p134_p1)  ;;  %v206_v16 = vld [vmem:[#allocation2 + $0x20] sm:$0xff] (%p134_p1)  ;;  %v210_v18 = vmax.f32 (%p134_p1), %v202_v10, %v204_v12 }
  0x12   :  { %199 = vst [vmem:[%s886_s2 + $0x8] sm:$0xf] (%p134_p1), %v692_v14  ;;  %v207_v17 = vld [vmem:[#allocation2 + $0x28] sm:$0xff] (%p134_p1)  ;;  %v208_v19 = vld [vmem:[#allocation2 + $0x30] sm:$0xff] (%p134_p1)  ;;  %v209_v20 = vld [vmem:[#allocation2 + $0x38] sm:$0xff] (%p134_p1)  ;;  %v211_v21 = vmax.f32 (%p134_p1), %v203_v11, %v205_v15  ;;  %v307_v23 = vshrl.u32 (%p134_p1), %v306_v13, 7 }
  0x13   :  { %v213_v24 = vmax.f32 (%p134_p1), %v206_v16, %v208_v19  ;;  %v214_v25 = vmax.f32 (%p134_p1), %v207_v17, %v209_v20  ;;  %v309_v30 = vand.u32 (%p134_p1), 127, %v306_v13 }
  0x14   :  { %v212_v27 = vmax.f32 (%p134_p1), %v210_v18, %v211_v21  ;;  %v312_v31 = vmul.u32 (%p134_p1), 128, %v307_v23 }
  0x15   :  { %v215_v29 = vmax.f32 (%p134_p1), %v213_v24, %v214_v25 }
  0x16   :  { %v288_v22 = vld [vmem:[#allocation3] sm:$0xff]  ;;  %v289_v26 = vld [vmem:[#allocation3 + $0x8] sm:$0xff]  ;;  %v216_v32 = vsub.f32 %v202_v10, %v212_v27  ;;  %v217_v33 = vsub.f32 %v203_v11, %v212_v27  ;;  %v218_v34 = vsub.f32 %v204_v12, %v212_v27  ;;  %v219_v35 = vsub.f32 %v205_v15, %v212_v27 }
  0x17   :  { %vm290_vm0 = vcmp.gt.s32.totalorder %v288_v22, 0  ;;  %vm292_vm1 = vcmp.gt.s32.totalorder %v289_v26, 0  ;;  %v220_v36 = vsub.f32 %v206_v16, %v215_v29  ;;  %v221_v37 = vsub.f32 %v207_v17, %v215_v29 }
  0x18   :  { %v291_v28 = vsel %vm290_vm0, %v288_v22, 0  ;;  %v293_v38 = vsel %vm292_vm1, %v289_v26, 0  ;;  %v222_v39 = vsub.f32 %v208_v19, %v215_v29  ;;  %v224_v40 = vmul.f32 1.442695, %v216_v32 }
  0x19   :  { %vm294_vm2 = vcmp.lt.s32.totalorder %v291_v28, 3  ;;  %v226_v41 = vmul.f32 1.442695, %v217_v33  ;;  %v228_v42 = vmul.f32 1.442695, %v218_v34  ;;  %v223_v43 = vsub.f32 %v209_v20, %v215_v29 }
  0x1a   :  { %v230_v44 = vmul.f32 1.442695, %v219_v35  ;;  %616 = vpow2.f32 %v224_v40  ;;  %v232_v45 = vmul.f32 1.442695, %v220_v36  ;;  %v295_v46 = vsel %vm294_vm2, %v291_v28, 3 }
  0x1b   :  { %v750_v47 = vadd.s32 %v312_v31, %v309_v30  ;;  %618 = vpow2.f32 %v226_v41  ;;  %v234_v48 = vmul.f32 1.442695, %v221_v37  ;;  %vm296_vm3 = vcmp.lt.s32.totalorder %v293_v38, 3 }
  0x1c   :  { %620 = vpow2.f32 %v228_v42  ;;  %v236_v49 = vmul.f32 1.442695, %v222_v39  ;;  %vm298_vm4 = vcmp.eq.s32.totalorder %v295_v46, 0  ;;  %v238_v50 = vmul.f32 1.442695, %v223_v43 }
  0x1d   :  { %622 = vpow2.f32 %v230_v44  ;;  %v297_v51 = vsel %vm296_vm3, %v293_v38, 3  ;;  %vm299_vm5 = vcmp.eq.s32.totalorder %v295_v46, 1  ;;  %vm300_vm6 = vcmp.eq.s32.totalorder %v295_v46, 2 }
  0x1e   :  { %624 = vpow2.f32 %v232_v45  ;;  %vm314_vm7 = vcmp.lt.s32.totalorder %v750_v47, 256  ;;  %vm301_vm8 = vcmp.eq.s32.totalorder %v295_v46, 3  ;;  %vm302_vm10 = vcmp.eq.s32.totalorder %v297_v51, 0  ;;  %v549_v45 = vld [vmem:[%s886_s2 + $0x8] sm:$0xf] }
  0x1f   :  { %626 = vpow2.f32 %v234_v48  ;;  %vm755_vm9 = vmand %vm298_vm4, %vm314_vm7  ;;  %vm303_vm12 = vcmp.eq.s32.totalorder %v297_v51, 1  ;;  %vm304_vm14 = vcmp.eq.s32.totalorder %v297_v51, 2  ;;  %vm305_vm0 = vcmp.eq.s32.totalorder %v297_v51, 3 }
  0x20   :  { %628 = vpow2.f32 %v236_v49  ;;  %vm761_vm11 = vmand %vm299_vm5, %vm314_vm7  ;;  %v539_v56 = vsel %vm755_vm9, 1.0, %v692_v14  ;;  %vm390_vm5 = vcmask 1041409  }
  0x21   :  { %630 = vpow2.f32 %v238_v50  ;;  %vm767_vm13 = vmand %vm300_vm6, %vm314_vm7  ;;  %v540_v58 = vsel %vm761_vm11, 1.0, %v692_v14  ;;  %vm392_vm6 = vcmask 1042434  }
  0x22   :  { %vm773_vm15 = vmand %vm301_vm8, %vm314_vm7  ;;  %v541_v60 = vsel %vm767_vm13, 1.0, %v692_v14  ;;  %vm394_vm8 = vcmask 1043459  }
  0x23   :  { %vm782_vm1 = vmand %vm302_vm10, %vm314_vm7  ;;  %v542_v63 = vsel %vm773_vm15, 1.0, %v692_v14 }
  0x24   :  { %vm791_vm2 = vmand %vm303_vm12, %vm314_vm7  ;;  %v543_v61 = vsel %vm782_vm1, 1.0, %v692_v14 }
  0x25   :  { %vm803_vm3 = vmand %vm304_vm14, %vm314_vm7  ;;  %v544_v0 = vsel %vm791_vm2, 1.0, %v692_v14  ;;  %v441_v1 = vadd.f32 %v543_v61, %v539_v56 }
  0x26   :  { %vm815_vm4 = vmand %vm305_vm0, %vm314_vm7  ;;  %v545_v3 = vsel %vm803_vm3, 1.0, %v692_v14  ;;  %v442_v4 = vadd.f32 %v544_v0, %v540_v58 }
  0x27   :  { %v617_v5 = vpop.eup %616  ;;  %v546_v6 = vsel %vm815_vm4, 1.0, %v692_v14  ;;  %v443_v7 = vadd.f32 %v545_v3, %v541_v60  ;;  %v445_v8 = vrot.slane %v441_v1, 4 }
  0x28   :  { %v619_v9 = vpop.eup %618  ;;  %v444_v10 = vadd.f32 %v546_v6, %v542_v63  ;;  %v451_v11 = vrot.slane %v442_v4, 4 }
  0x29   :  { %v621_v12 = vpop.eup %620  ;;  %v240_v13 = vadd.f32 %v619_v9, %v617_v5  ;;  %v446_v15 = vadd.f32 %v445_v8, %v441_v1  ;;  %v457_v16 = vrot.slane %v443_v7, 4 }
  0x2a   :  { %v623_v17 = vpop.eup %622  ;;  %v452_v18 = vadd.f32 %v451_v11, %v442_v4  ;;  %v463_v19 = vrot.slane %v444_v10, 4 }
  0x2b   :  { %v625_v20 = vpop.eup %624  ;;  %v241_v21 = vadd.f32 %v621_v12, %v240_v13  ;;  %v447_v22 = vrot.slane %v446_v15, 2  ;;  %v458_v23 = vadd.f32 %v457_v16, %v443_v7 }
  0x2c   :  { %v627_v24 = vpop.eup %626  ;;  %v453_v25 = vrot.slane %v452_v18, 2  ;;  %v464_v26 = vadd.f32 %v463_v19, %v444_v10 }
  0x2d   :  { %v629_v14 = vpop.eup %628  ;;  %v242_v27 = vadd.f32 %v623_v17, %v241_v21  ;;  %v243_v28 = vadd.f32 %v627_v24, %v625_v20  ;;  %v448_v29 = vadd.f32 %v447_v22, %v446_v15  ;;  %v459_v30 = vrot.slane %v458_v23, 2 }
  0x2e   :  { %v631_v31 = vpop.eup %630  ;;  %v454_v32 = vadd.f32 %v453_v25, %v452_v18  ;;  %v465_v33 = vrot.slane %v464_v26, 2 }
  0x2f   :  { %v244_v34 = vadd.f32 %v629_v14, %v243_v28  ;;  %632 = vrcp.f32 %v242_v27  ;;  %v449_v35 = vrot.slane %v448_v29, 1  ;;  %v460_v36 = vadd.f32 %v459_v30, %v458_v23 }
  0x30   :  { %v455_v37 = vrot.slane %v454_v32, 1  ;;  %v466_v38 = vadd.f32 %v465_v33, %v464_v26 }
  0x31   :  { %v245_v39 = vadd.f32 %v631_v31, %v244_v34  ;;  %v450_v40 = vadd.f32 %v449_v35, %v448_v29  ;;  %v461_v41 = vrot.slane %v460_v36, 1 }
  0x32   :  { %v456_v42 = vadd.f32 %v455_v37, %v454_v32  ;;  %v467_v43 = vrot.slane %v466_v38, 1 }
  0x33   :  { %634 = vrcp.f32 %v245_v39  ;;  %v462_v44 = vadd.f32 %v461_v41, %v460_v36 }
  0x34   :  { %v468_v46 = vadd.f32 %v467_v43, %v466_v38  ;;  %v473_v48 = vsel %vm390_vm5, %v456_v42, %v450_v40 }
  0x35   :  { %v474_v49 = vsel %vm392_vm6, %v462_v44, %v473_v48 }
  0x36   :  { %v475_v50 = vsel %vm394_vm8, %v468_v46, %v474_v49 }
  0x37   :  { %v477_v51 = vadd.f32 %v549_v45, %v475_v50 }
  0x39   :  { %550 = vst [vmem:[%s886_s2 + $0x8] sm:$0xf] %v477_v51 }
  0x3c   :  { %v633_v56 = vpop.eup %632 }
  0x3d   :  { %v247_v58 = vmul.f32 %v633_v56, %v617_v5  ;;  %v248_v60 = vmul.f32 %v633_v56, %v619_v9  ;;  %v249_v61 = vmul.f32 %v633_v56, %v621_v12  ;;  %v250_v63 = vmul.f32 %v633_v56, %v623_v17 }
  0x3f   :  { %v256_v0 = vmul.f32 0.5, %v247_v58  ;;  %v257_v3 = vmul.f32 0.5, %v248_v60  ;;  %v258_v8 = vmul.f32 0.5, %v249_v61  ;;  %v259_v11 = vmul.f32 0.5, %v250_v63 }
  0x40   :  { %v635_v1 = vpop.eup %634 }
  0x41   :  { %v252_v4 = vmul.f32 %v635_v1, %v625_v20  ;;  %v253_v6 = vmul.f32 %v635_v1, %v627_v24  ;;  %v254_v7 = vmul.f32 %v635_v1, %v629_v14  ;;  %v255_v10 = vmul.f32 %v635_v1, %v631_v31 }
  0x42   :  { %636 = vtanh.f32 %v256_v0 }
  0x43   :  { %v260_v13 = vmul.f32 0.5, %v252_v4  ;;  %v261_v15 = vmul.f32 0.5, %v253_v6  ;;  %638 = vtanh.f32 %v257_v3  ;;  %v262_v16 = vmul.f32 0.5, %v254_v7 }
  0x44   :  { %640 = vtanh.f32 %v258_v8  ;;  %v263_v18 = vmul.f32 0.5, %v255_v10 }
  0x45   :  { %642 = vtanh.f32 %v259_v11 }
  0x46   :  { %644 = vtanh.f32 %v260_v13 }
  0x47   :  { %646 = vtanh.f32 %v261_v15 }
  0x48   :  { %648 = vtanh.f32 %v262_v16 }
  0x49   :  { %650 = vtanh.f32 %v263_v18 }
  0x4f   :  { %v637_v5 = vpop.eup %636 }
  0x50   :  { %v272_v9 = vmul.f32 0.5, %v637_v5  ;;  %v639_v12 = vpop.eup %638 }
  0x51   :  { %v641_v17 = vpop.eup %640  ;;  %v273_v19 = vmul.f32 0.5, %v639_v12 }
  0x52   :  { %v280_v20 = vadd.f32 0.5, %v272_v9  ;;  %v643_v21 = vpop.eup %642  ;;  %v274_v22 = vmul.f32 0.5, %v641_v17 }
  0x53   :  { %v645_v23 = vpop.eup %644  ;;  %v275_v24 = vmul.f32 0.5, %v643_v21  ;;  %v281_v25 = vadd.f32 0.5, %v273_v19 }
  0x54   :  { %v325_v26 = vsel %vm314_vm7, %v280_v20, 0.0  ;;  %v647_v14 = vpop.eup %646  ;;  %v276_v27 = vmul.f32 0.5, %v645_v23  ;;  %v282_v28 = vadd.f32 0.5, %v274_v22 }
  0x55   :  { %v649_v29 = vpop.eup %648  ;;  %v277_v30 = vmul.f32 0.5, %v647_v14  ;;  %v283_v31 = vadd.f32 0.5, %v275_v24  ;;  %v326_v32 = vsel %vm314_vm7, %v281_v25, 0.0  ;;  %v333_v37 = vsel %vm755_vm9, %v325_v26, 0.0 }
  0x56   :  { %v651_v33 = vpop.eup %650  ;;  %v278_v34 = vmul.f32 0.5, %v649_v29  ;;  %v284_v35 = vadd.f32 0.5, %v276_v27  ;;  %v327_v36 = vsel %vm314_vm7, %v282_v28, 0.0  ;;  %v334_v41 = vsel %vm761_vm11, %v326_v32, 0.0 }
  0x57   :  { %v279_v38 = vmul.f32 0.5, %v651_v33  ;;  %v285_v39 = vadd.f32 0.5, %v277_v30  ;;  %v328_v40 = vsel %vm314_vm7, %v283_v31, 0.0  ;;  %v335_v44 = vsel %vm767_vm13, %v327_v36, 0.0 }
  0x58   :  { %v286_v42 = vadd.f32 0.5, %v278_v34  ;;  %v329_v43 = vsel %vm314_vm7, %v284_v35, 0.0  ;;  %v336_v45 = vsel %vm773_vm15, %v328_v40, 0.0 }
  0x59   :  { %v287_v52 = vadd.f32 0.5, %v279_v38  ;;  %v330_v46 = vsel %vm314_vm7, %v285_v39, 0.0  ;;  %v337_v48 = vsel %vm782_vm1, %v329_v43, 0.0  ;;  %v401_v49 = vadd.f32 %v329_v43, %v325_v26 }
  0x5a   :  { %v331_v53 = vsel %vm314_vm7, %v286_v42, 0.0  ;;  %v338_v50 = vsel %vm791_vm2, %v330_v46, 0.0  ;;  %v358_v51 = vadd.f32 %v337_v48, %v333_v37  ;;  %v402_v54 = vadd.f32 %v330_v46, %v326_v32  ;;  %v547_v48 = vld [vmem:[%s886_s2 + $0x4] sm:$0xf] }
  0x5b   :  { %v332_v55 = vsel %vm314_vm7, %v287_v52, 0.0  ;;  %v339_v56 = vsel %vm803_vm3, %v331_v53, 0.0  ;;  %v359_v58 = vadd.f32 %v338_v50, %v334_v41  ;;  %v403_v60 = vadd.f32 %v331_v53, %v327_v36 }
  0x5c   :  { %v340_v57 = vsel %vm815_vm4, %v332_v55, 0.0  ;;  %v360_v61 = vadd.f32 %v339_v56, %v335_v44  ;;  %v362_v63 = vrot.slane %v358_v51, 4  ;;  %v404_v0 = vadd.f32 %v332_v55, %v328_v40 }
  0x5d   :  { %v361_v1 = vadd.f32 %v340_v57, %v336_v45  ;;  %v368_v3 = vrot.slane %v359_v58, 4  ;;  %v405_v59 = vrot.slane %v401_v49, 4  ;;  %v411_v4 = vrot.slane %v402_v54, 4  ;;  %v357_v45 = vld [vmem:[%s886_s2] sm:$0xf] }
  0x5e   :  { %v363_v6 = vadd.f32 %v362_v63, %v358_v51  ;;  %v374_v7 = vrot.slane %v360_v61, 4  ;;  %v417_v8 = vrot.slane %v403_v60, 4  ;;  %v423_v47 = vrot.slane %v404_v0, 4 }
  0x5f   :  { %v369_v10 = vadd.f32 %v368_v3, %v359_v58  ;;  %v380_v11 = vrot.slane %v361_v1, 4  ;;  %v406_v62 = vadd.f32 %v405_v59, %v401_v49  ;;  %v412_v13 = vadd.f32 %v411_v4, %v402_v54 }
  0x60   :  { %v364_v15 = vrot.slane %v363_v6, 2  ;;  %v375_v16 = vadd.f32 %v374_v7, %v360_v61  ;;  %v418_v18 = vadd.f32 %v417_v8, %v403_v60  ;;  %v424_v2 = vadd.f32 %v423_v47, %v404_v0 }
  0x61   :  { %v370_v5 = vrot.slane %v369_v10, 2  ;;  %v381_v9 = vadd.f32 %v380_v11, %v361_v1  ;;  %v407_v12 = vrot.slane %v406_v62, 2  ;;  %v413_v17 = vrot.slane %v412_v13, 2 }
  0x62   :  { %v365_v19 = vadd.f32 %v364_v15, %v363_v6  ;;  %v376_v20 = vrot.slane %v375_v16, 2  ;;  %v419_v21 = vrot.slane %v418_v18, 2  ;;  %v425_v22 = vrot.slane %v424_v2, 2 }
  0x63   :  { %v371_v23 = vadd.f32 %v370_v5, %v369_v10  ;;  %v382_v24 = vrot.slane %v381_v9, 2  ;;  %v408_v25 = vadd.f32 %v407_v12, %v406_v62  ;;  %v414_v26 = vadd.f32 %v413_v17, %v412_v13 }
  0x64   :  { %v366_v14 = vrot.slane %v365_v19, 1  ;;  %v377_v27 = vadd.f32 %v376_v20, %v375_v16  ;;  %v420_v28 = vadd.f32 %v419_v21, %v418_v18  ;;  %v426_v29 = vadd.f32 %v425_v22, %v424_v2 }
  0x65   :  { %v372_v30 = vrot.slane %v371_v23, 1  ;;  %v383_v31 = vadd.f32 %v382_v24, %v381_v9  ;;  %v409_v32 = vrot.slane %v408_v25, 1  ;;  %v415_v33 = vrot.slane %v414_v26, 1 }
  0x66   :  { %v367_v34 = vadd.f32 %v366_v14, %v365_v19  ;;  %v378_v35 = vrot.slane %v377_v27, 1  ;;  %v421_v36 = vrot.slane %v420_v28, 1  ;;  %v427_v37 = vrot.slane %v426_v29, 1 }
  0x67   :  { %v373_v38 = vadd.f32 %v372_v30, %v371_v23  ;;  %v384_v39 = vrot.slane %v383_v31, 1  ;;  %v410_v40 = vadd.f32 %v409_v32, %v408_v25  ;;  %v416_v41 = vadd.f32 %v415_v33, %v414_v26 }
  0x68   :  { %v379_v42 = vadd.f32 %v378_v35, %v377_v27  ;;  %v422_v43 = vadd.f32 %v421_v36, %v420_v28  ;;  %v428_v44 = vadd.f32 %v427_v37, %v426_v29 }
  0x69   :  { %v385_v52 = vadd.f32 %v384_v39, %v383_v31  ;;  %v391_v46 = vsel %vm390_vm5, %v373_v38, %v367_v34  ;;  %v433_v49 = vsel %vm390_vm5, %v416_v41, %v410_v40 }
  0x6a   :  { %v393_v53 = vsel %vm392_vm6, %v379_v42, %v391_v46  ;;  %v434_v50 = vsel %vm392_vm6, %v422_v43, %v433_v49 }
  0x6b   :  { %v395_v51 = vsel %vm394_vm8, %v385_v52, %v393_v53  ;;  %v435_v54 = vsel %vm394_vm8, %v428_v44, %v434_v50 }
  0x6c   :  { %v397_v55 = vadd.f32 %v395_v51, %v357_v45  ;;  %v437_v56 = vadd.f32 %v547_v48, %v435_v54 }
  0x6e   :  { %398 = vst [vmem:[%s886_s2] sm:$0xf] %v397_v55  ;;  %548 = vst [vmem:[%s886_s2 + $0x4] sm:$0xf] %v437_v56 }

</bundles_post_ra>
